<compile_context>
chip_gen: v7x
topology: tpu7x:2x2x1
jax: 0.10.0
libtpu: 0.0.40
codegen_flags: <defaults>
</compile_context>

<pallas_src>
import functools

import jax
import jax.numpy as jnp
from jax.experimental import pallas as pl
from jax.experimental.pallas import tpu as pltpu

_HI = jax.lax.Precision.HIGHEST


def _leaky(x):
    return jnp.where(x >= 0, x, 0.1 * x)


# -----------------------------------------------------------------------------
# Fused depthwise-3x3 + 1x1-conv + channel-attention kernel.
# One grid step == one batch sample.  Dynamic per-sample kernels / attention
# arrive pre-computed and pre-selected via the BlockSpec batch index.
# -----------------------------------------------------------------------------
def _da_conv_kernel(feat_ref, k_ref, att_ref, wpw_ref, bpw_ref, o_ref, *, H, W):
    HW = H * W
    x = feat_ref[0]                               # (C, HW) f32, lane-dense
    att = att_ref[0]                              # (C, 1)   per-sample CA weights
    C = x.shape[0]

    # Spatial boundary masks, hoisted once (full-shape so no bool broadcast).
    lane = jax.lax.broadcasted_iota(jnp.int32, (C, HW), 1)
    top = lane >= W                               # row >= 1      (needed for dy == 0)
    bot = lane < (H - 1) * W                      # row <= H - 2  (dy == 2)
    if (W & (W - 1)) == 0:
        col = lane & (W - 1)                      # power-of-two width -> bitwise
    else:
        col = lane % W
    lft = col >= 1                                # dx == 0
    rgt = col <= W - 2                            # dx == 2

    # Depthwise 3x3 with dynamic per-(sample,channel) kernels.
    # Tap order i = dy*3 + dx matches the wrapper's tap-major kern layout.
    # Taps are built in-kernel: lane roll by (dy-1)*W + (dx-1), then mask.
    # Every circularly-wrapped lane coincides with a masked position.
    t = k_ref[0, 4] * x                           # centre tap: no shift, no mask
    for i in range(9):
        if i == 4:
            continue
        dy, dx = i // 3, i % 3
        off = (dy - 1) * W + (dx - 1)             # tap[p] = x[p + off] where valid
        tap = pltpu.roll(x, shift=(-off) % HW, axis=1)
        m = None
        for cond in ((top if dy == 0 else None), (bot if dy == 2 else None),
                     (lft if dx == 0 else None), (rgt if dx == 2 else None)):
            if cond is not None:
                m = cond if m is None else jnp.logical_and(m, cond)
        t = t + k_ref[0, i] * jnp.where(m, tap, 0.0)
    t = _leaky(t)

    # 1x1 conv (channel mix) + channel-attention residual.
    u = jnp.dot(wpw_ref[...], t, preferred_element_type=jnp.float32) + bpw_ref[...]
    o_ref[0] = u + x * att


# -----------------------------------------------------------------------------
# One-time weight re-layout (done once, NOT per forward call)
# -----------------------------------------------------------------------------
def prepare_da_conv_params(p, c_out):
    cin = p["W1"].shape[0]
    return dict(
        W1=p["W1"],                                   # (Cin, Cin)
        W2=p["W2"],                                   # (9*Cout, Cin) torch Linear layout
        V1=p["V1"].reshape(-1, cin),                  # (Cin//red, Cin)
        V2=p["V2"].reshape(c_out, -1),                # (Cout, Cin//red)
        Wpw=p["w1x1"].reshape(c_out, c_out),          # (Cout, Cout)
        bpw=p["b1x1"].reshape(c_out, 1),              # (Cout, 1)
    )


# -----------------------------------------------------------------------------
# Wrapper: tiny degradation branch hoisted (runs ONCE), then one pallas_call
# -----------------------------------------------------------------------------
def da_conv_forward(feat, rep, q):
    B, C, H, W = feat.shape
    HW = H * W

    # --- degradation branch (~20K MACs): computed once, outside the grid ------
    h = _leaky(jnp.dot(rep, q["W1"].T, precision=_HI))                     # (B, Cin)
    kern = jnp.dot(h, q["W2"].T, precision=_HI)                            # (B, C*9) chan-major
    kern = kern.reshape(B, C, 9).transpose(0, 2, 1)[..., None]             # (B, 9, C, 1) tap-major
    g = _leaky(jnp.dot(rep, q["V1"].T, precision=_HI))                     # (B, Cr)
    att = jax.nn.sigmoid(jnp.dot(g, q["V2"].T, precision=_HI))[..., None]  # (B, C, 1)

    feat_flat = feat.reshape(B, C, HW)   # lane-dense; HW multiple of 128 here

    out = pl.pallas_call(
        functools.partial(_da_conv_kernel, H=H, W=W),
        out_shape=jax.ShapeDtypeStruct((B, C, HW), jnp.float32),
        grid=(B,),
        in_specs=[
            pl.BlockSpec((1, C, HW), lambda b: (b, 0, 0)),       # feature map (per sample)
            pl.BlockSpec((1, 9, C, 1), lambda b: (b, 0, 0, 0)),  # dyn 3x3 kernels (per sample)
            pl.BlockSpec((1, C, 1), lambda b: (b, 0, 0)),        # CA attention (per sample)
            pl.BlockSpec((C, C), lambda b: (0, 0)),              # 1x1 conv weight
            pl.BlockSpec((C, 1), lambda b: (0, 0)),              # 1x1 conv bias
        ],
        out_specs=pl.BlockSpec((1, C, HW), lambda b: (b, 0, 0)),
        compiler_params=pltpu.CompilerParams(
            dimension_semantics=("parallel",)),
    )(feat_flat, kern, att, q["Wpw"], q["bpw"])
    return out.reshape(B, C, H, W)


# -----------------------------------------------------------------------------
# Pure-JAX reference (mirrors the PyTorch module; HIGHEST-precision dots)
# -----------------------------------------------------------------------------
def ref_da_conv(feat, rep, p):
    B, C, H, W = feat.shape
    h = _leaky(jnp.dot(rep, p["W1"].T, precision=_HI))
    k = jnp.dot(h, p["W2"].T, precision=_HI).reshape(B, C, 3, 3)
    xpad = jnp.pad(feat, ((0, 0), (0, 0), (1, 1), (1, 1)))
    out = jnp.zeros_like(feat)
    for dy in range(3):
        for dx in range(3):
            out = out + (k[:, :, dy, dx][:, :, None, None]
                         * xpad[:, :, dy:dy + H, dx:dx + W])
    out = _leaky(out)
    w = p["w1x1"].reshape(C, C)
    out = (jnp.einsum("oc,bchw->bohw", w, out, precision=_HI)
           + p["b1x1"][None, :, None, None])
    g = _leaky(jnp.dot(rep, p["V1"].reshape(-1, rep.shape[1]).T, precision=_HI))
    att = jax.nn.sigmoid(jnp.dot(g, p["V2"].reshape(C, -1).T, precision=_HI))
    return out + feat * att[:, :, None, None]


# -----------------------------------------------------------------------------
def init_params(key, c_in, c_out, reduction):
    ks = jax.random.split(key, 6)

    def nrm(k, shape, fan_in):
        return jax.random.normal(k, shape, jnp.float32) / jnp.sqrt(fan_in)

    return dict(
        W1=nrm(ks[0], (c_in, c_in), c_in),
        W2=nrm(ks[1], (c_out * 9, c_in), c_in),
        w1x1=nrm(ks[2], (c_out, c_out, 1, 1), c_out),
        b1x1=0.1 * jax.random.normal(ks[3], (c_out,), jnp.float32),
        V1=nrm(ks[4], (c_in // reduction, c_in, 1, 1), c_in),
        V2=nrm(ks[5], (c_out, c_in // reduction, 1, 1), c_in // reduction),
    )


if __name__ == "__main__":
    B, C_in, C_out, H, W, red = 2, 64, 8, 16, 16, 8

    key = jax.random.PRNGKey(0)
    k_feat, k_rep, k_par = jax.random.split(key, 3)
    feat = jax.random.normal(k_feat, (B, C_out, H, W), jnp.float32)
    rep = jax.random.normal(k_rep, (B, C_in), jnp.float32)
    raw = init_params(k_par, C_in, C_out, red)
    prepped = prepare_da_conv_params(raw, C_out)

    fwd = jax.jit(da_conv_forward)
    out = jax.block_until_ready(fwd(feat, rep, prepped))

    ref = ref_da_conv(feat, rep, raw)
    assert out.shape == (B, C_out, H, W)
    assert bool(jnp.all(jnp.isfinite(out)))
    assert jnp.allclose(out, ref, atol=1e-3, rtol=1e-3), \
        float(jnp.max(jnp.abs(out - ref)))

    print("KERNEL_OK")
</pallas_src>

<mosaic_0001>
module attributes {stable_mosaic.version = 11 : i64} {
  func.func @_da_conv_kernel(%arg0: i32, %arg1: memref<1x8x256xf32, #tpu.memory_space<vmem>>, %arg2: memref<1x9x8x1xf32, #tpu.memory_space<vmem>>, %arg3: memref<1x8x1xf32, #tpu.memory_space<vmem>>, %arg4: memref<8x8xf32, #tpu.memory_space<vmem>>, %arg5: memref<8x1xf32, #tpu.memory_space<vmem>>, %arg6: memref<1x8x256xf32, #tpu.memory_space<vmem>>) attributes {dimension_semantics = [#tpu.dimension_semantics<parallel>], iteration_bounds = array<i64: 2>, scalar_prefetch = 0 : i64, scratch_operands = 0 : i64, tpu.core_type = #tpu.core_type<tc>, window_params = [{transform_indices = @transform_0, window_bounds = array<i64: 1, 8, 256>}, {transform_indices = @transform_1, window_bounds = array<i64: 1, 9, 8, 1>}, {transform_indices = @transform_2, window_bounds = array<i64: 1, 8, 1>}, {pipeline_mode = #tpu.pipeline_mode<synchronous>, transform_indices = @transform_3, window_bounds = array<i64: 8, 8>}, {pipeline_mode = #tpu.pipeline_mode<synchronous>, transform_indices = @transform_4, window_bounds = array<i64: 8, 1>}, {transform_indices = @transform_5, window_bounds = array<i64: 1, 8, 256>}]} {
    %c0 = arith.constant 0 : index
    %c0_0 = arith.constant 0 : index
    %c0_1 = arith.constant 0 : index
    %0 = vector.load %arg1[%c0, %c0_0, %c0_1] : memref<1x8x256xf32, #tpu.memory_space<vmem>>, vector<1x8x256xf32>
    %1 = vector.shape_cast %0 : vector<1x8x256xf32> to vector<8x256xf32>
    %c0_2 = arith.constant 0 : index
    %c0_3 = arith.constant 0 : index
    %c0_4 = arith.constant 0 : index
    %2 = vector.load %arg3[%c0_2, %c0_3, %c0_4] : memref<1x8x1xf32, #tpu.memory_space<vmem>>, vector<1x8x1xf32>
    %3 = vector.shape_cast %2 : vector<1x8x1xf32> to vector<8x1xf32>
    %4 = tpu.iota {dimensions = array<i32: 1>} : vector<8x256xi32>
    %c16_i32 = arith.constant 16 : i32
    %5 = vector.broadcast %c16_i32 : i32 to vector<8x256xi32>
    %6 = arith.cmpi sge, %4, %5 : vector<8x256xi32>
    %c240_i32 = arith.constant 240 : i32
    %7 = vector.broadcast %c240_i32 : i32 to vector<8x256xi32>
    %8 = arith.cmpi slt, %4, %7 : vector<8x256xi32>
    %c15_i32 = arith.constant 15 : i32
    %9 = vector.broadcast %c15_i32 : i32 to vector<8x256xi32>
    %10 = arith.andi %4, %9 : vector<8x256xi32>
    %c1_i32 = arith.constant 1 : i32
    %11 = vector.broadcast %c1_i32 : i32 to vector<8x256xi32>
    %12 = arith.cmpi sge, %10, %11 : vector<8x256xi32>
    %c14_i32 = arith.constant 14 : i32
    %13 = vector.broadcast %c14_i32 : i32 to vector<8x256xi32>
    %14 = arith.cmpi sle, %10, %13 : vector<8x256xi32>
    %c0_5 = arith.constant 0 : index
    %c4 = arith.constant 4 : index
    %c0_6 = arith.constant 0 : index
    %c0_7 = arith.constant 0 : index
    %15 = vector.load %arg2[%c0_5, %c4, %c0_6, %c0_7] : memref<1x9x8x1xf32, #tpu.memory_space<vmem>>, vector<1x1x8x1xf32>
    %16 = vector.shape_cast %15 : vector<1x1x8x1xf32> to vector<8x1xf32>
    %17 = vector.broadcast %16 : vector<8x1xf32> to vector<8x256xf32>
    %18 = arith.mulf %17, %1 : vector<8x256xf32>
    %c17_i32 = arith.constant 17 : i32
    %19 = tpu.dynamic_rotate %1 by %c17_i32 dim 1 : vector<8x256xf32>, i32 -> vector<8x256xf32>
    %20 = arith.andi %6, %12 : vector<8x256xi1>
    %c0_8 = arith.constant 0 : index
    %c0_9 = arith.constant 0 : index
    %c0_10 = arith.constant 0 : index
    %c0_11 = arith.constant 0 : index
    %21 = vector.load %arg2[%c0_8, %c0_9, %c0_10, %c0_11] : memref<1x9x8x1xf32, #tpu.memory_space<vmem>>, vector<1x1x8x1xf32>
    %22 = vector.shape_cast %21 : vector<1x1x8x1xf32> to vector<8x1xf32>
    %cst = arith.constant 0.000000e+00 : f32
    %23 = vector.broadcast %cst : f32 to vector<8x256xf32>
    %24 = arith.select %20, %19, %23 : vector<8x256xi1>, vector<8x256xf32>
    %25 = vector.broadcast %22 : vector<8x1xf32> to vector<8x256xf32>
    %26 = arith.mulf %25, %24 : vector<8x256xf32>
    %27 = arith.addf %18, %26 : vector<8x256xf32>
    %c16_i32_12 = arith.constant 16 : i32
    %28 = tpu.dynamic_rotate %1 by %c16_i32_12 dim 1 : vector<8x256xf32>, i32 -> vector<8x256xf32>
    %c0_13 = arith.constant 0 : index
    %c1 = arith.constant 1 : index
    %c0_14 = arith.constant 0 : index
    %c0_15 = arith.constant 0 : index
    %29 = vector.load %arg2[%c0_13, %c1, %c0_14, %c0_15] : memref<1x9x8x1xf32, #tpu.memory_space<vmem>>, vector<1x1x8x1xf32>
    %30 = vector.shape_cast %29 : vector<1x1x8x1xf32> to vector<8x1xf32>
    %cst_16 = arith.constant 0.000000e+00 : f32
    %31 = vector.broadcast %cst_16 : f32 to vector<8x256xf32>
    %32 = arith.select %6, %28, %31 : vector<8x256xi1>, vector<8x256xf32>
    %33 = vector.broadcast %30 : vector<8x1xf32> to vector<8x256xf32>
    %34 = arith.mulf %33, %32 : vector<8x256xf32>
    %35 = arith.addf %27, %34 : vector<8x256xf32>
    %c15_i32_17 = arith.constant 15 : i32
    %36 = tpu.dynamic_rotate %1 by %c15_i32_17 dim 1 : vector<8x256xf32>, i32 -> vector<8x256xf32>
    %37 = arith.andi %6, %14 : vector<8x256xi1>
    %c0_18 = arith.constant 0 : index
    %c2 = arith.constant 2 : index
    %c0_19 = arith.constant 0 : index
    %c0_20 = arith.constant 0 : index
    %38 = vector.load %arg2[%c0_18, %c2, %c0_19, %c0_20] : memref<1x9x8x1xf32, #tpu.memory_space<vmem>>, vector<1x1x8x1xf32>
    %39 = vector.shape_cast %38 : vector<1x1x8x1xf32> to vector<8x1xf32>
    %cst_21 = arith.constant 0.000000e+00 : f32
    %40 = vector.broadcast %cst_21 : f32 to vector<8x256xf32>
    %41 = arith.select %37, %36, %40 : vector<8x256xi1>, vector<8x256xf32>
    %42 = vector.broadcast %39 : vector<8x1xf32> to vector<8x256xf32>
    %43 = arith.mulf %42, %41 : vector<8x256xf32>
    %44 = arith.addf %35, %43 : vector<8x256xf32>
    %c1_i32_22 = arith.constant 1 : i32
    %45 = tpu.dynamic_rotate %1 by %c1_i32_22 dim 1 : vector<8x256xf32>, i32 -> vector<8x256xf32>
    %c0_23 = arith.constant 0 : index
    %c3 = arith.constant 3 : index
    %c0_24 = arith.constant 0 : index
    %c0_25 = arith.constant 0 : index
    %46 = vector.load %arg2[%c0_23, %c3, %c0_24, %c0_25] : memref<1x9x8x1xf32, #tpu.memory_space<vmem>>, vector<1x1x8x1xf32>
    %47 = vector.shape_cast %46 : vector<1x1x8x1xf32> to vector<8x1xf32>
    %cst_26 = arith.constant 0.000000e+00 : f32
    %48 = vector.broadcast %cst_26 : f32 to vector<8x256xf32>
    %49 = arith.select %12, %45, %48 : vector<8x256xi1>, vector<8x256xf32>
    %50 = vector.broadcast %47 : vector<8x1xf32> to vector<8x256xf32>
    %51 = arith.mulf %50, %49 : vector<8x256xf32>
    %52 = arith.addf %44, %51 : vector<8x256xf32>
    %c255_i32 = arith.constant 255 : i32
    %53 = tpu.dynamic_rotate %1 by %c255_i32 dim 1 : vector<8x256xf32>, i32 -> vector<8x256xf32>
    %c0_27 = arith.constant 0 : index
    %c5 = arith.constant 5 : index
    %c0_28 = arith.constant 0 : index
    %c0_29 = arith.constant 0 : index
    %54 = vector.load %arg2[%c0_27, %c5, %c0_28, %c0_29] : memref<1x9x8x1xf32, #tpu.memory_space<vmem>>, vector<1x1x8x1xf32>
    %55 = vector.shape_cast %54 : vector<1x1x8x1xf32> to vector<8x1xf32>
    %cst_30 = arith.constant 0.000000e+00 : f32
    %56 = vector.broadcast %cst_30 : f32 to vector<8x256xf32>
    %57 = arith.select %14, %53, %56 : vector<8x256xi1>, vector<8x256xf32>
    %58 = vector.broadcast %55 : vector<8x1xf32> to vector<8x256xf32>
    %59 = arith.mulf %58, %57 : vector<8x256xf32>
    %60 = arith.addf %52, %59 : vector<8x256xf32>
    %c241_i32 = arith.constant 241 : i32
    %61 = tpu.dynamic_rotate %1 by %c241_i32 dim 1 : vector<8x256xf32>, i32 -> vector<8x256xf32>
    %62 = arith.andi %8, %12 : vector<8x256xi1>
    %c0_31 = arith.constant 0 : index
    %c6 = arith.constant 6 : index
    %c0_32 = arith.constant 0 : index
    %c0_33 = arith.constant 0 : index
    %63 = vector.load %arg2[%c0_31, %c6, %c0_32, %c0_33] : memref<1x9x8x1xf32, #tpu.memory_space<vmem>>, vector<1x1x8x1xf32>
    %64 = vector.shape_cast %63 : vector<1x1x8x1xf32> to vector<8x1xf32>
    %cst_34 = arith.constant 0.000000e+00 : f32
    %65 = vector.broadcast %cst_34 : f32 to vector<8x256xf32>
    %66 = arith.select %62, %61, %65 : vector<8x256xi1>, vector<8x256xf32>
    %67 = vector.broadcast %64 : vector<8x1xf32> to vector<8x256xf32>
    %68 = arith.mulf %67, %66 : vector<8x256xf32>
    %69 = arith.addf %60, %68 : vector<8x256xf32>
    %c240_i32_35 = arith.constant 240 : i32
    %70 = tpu.dynamic_rotate %1 by %c240_i32_35 dim 1 : vector<8x256xf32>, i32 -> vector<8x256xf32>
    %c0_36 = arith.constant 0 : index
    %c7 = arith.constant 7 : index
    %c0_37 = arith.constant 0 : index
    %c0_38 = arith.constant 0 : index
    %71 = vector.load %arg2[%c0_36, %c7, %c0_37, %c0_38] : memref<1x9x8x1xf32, #tpu.memory_space<vmem>>, vector<1x1x8x1xf32>
    %72 = vector.shape_cast %71 : vector<1x1x8x1xf32> to vector<8x1xf32>
    %cst_39 = arith.constant 0.000000e+00 : f32
    %73 = vector.broadcast %cst_39 : f32 to vector<8x256xf32>
    %74 = arith.select %8, %70, %73 : vector<8x256xi1>, vector<8x256xf32>
    %75 = vector.broadcast %72 : vector<8x1xf32> to vector<8x256xf32>
    %76 = arith.mulf %75, %74 : vector<8x256xf32>
    %77 = arith.addf %69, %76 : vector<8x256xf32>
    %c239_i32 = arith.constant 239 : i32
    %78 = tpu.dynamic_rotate %1 by %c239_i32 dim 1 : vector<8x256xf32>, i32 -> vector<8x256xf32>
    %79 = arith.andi %8, %14 : vector<8x256xi1>
    %c0_40 = arith.constant 0 : index
    %c8 = arith.constant 8 : index
    %c0_41 = arith.constant 0 : index
    %c0_42 = arith.constant 0 : index
    %80 = vector.load %arg2[%c0_40, %c8, %c0_41, %c0_42] : memref<1x9x8x1xf32, #tpu.memory_space<vmem>>, vector<1x1x8x1xf32>
    %81 = vector.shape_cast %80 : vector<1x1x8x1xf32> to vector<8x1xf32>
    %cst_43 = arith.constant 0.000000e+00 : f32
    %82 = vector.broadcast %cst_43 : f32 to vector<8x256xf32>
    %83 = arith.select %79, %78, %82 : vector<8x256xi1>, vector<8x256xf32>
    %84 = vector.broadcast %81 : vector<8x1xf32> to vector<8x256xf32>
    %85 = arith.mulf %84, %83 : vector<8x256xf32>
    %86 = arith.addf %77, %85 : vector<8x256xf32>
    %cst_44 = arith.constant 0.000000e+00 : f32
    %87 = vector.broadcast %cst_44 : f32 to vector<8x256xf32>
    %88 = arith.cmpf oge, %86, %87 : vector<8x256xf32>
    %cst_45 = arith.constant 1.000000e-01 : f32
    %89 = vector.broadcast %cst_45 : f32 to vector<8x256xf32>
    %90 = arith.mulf %89, %86 : vector<8x256xf32>
    %91 = arith.select %88, %86, %90 : vector<8x256xi1>, vector<8x256xf32>
    %c0_46 = arith.constant 0 : index
    %c0_47 = arith.constant 0 : index
    %92 = vector.load %arg4[%c0_46, %c0_47] : memref<8x8xf32, #tpu.memory_space<vmem>>, vector<8x8xf32>
    %cst_48 = arith.constant dense<0.000000e+00> : vector<8x256xf32>
    %93 = tpu.matmul %92, %91, %cst_48 {dimension_numbers = #tpu.dot_dimension_numbers<[1], [0], [0], [1], [0, 0, 1, 1], [], []>} : vector<8x8xf32>, vector<8x256xf32>, vector<8x256xf32> -> vector<8x256xf32>
    %c0_49 = arith.constant 0 : index
    %c0_50 = arith.constant 0 : index
    %94 = vector.load %arg5[%c0_49, %c0_50] : memref<8x1xf32, #tpu.memory_space<vmem>>, vector<8x1xf32>
    %95 = vector.broadcast %94 : vector<8x1xf32> to vector<8x256xf32>
    %96 = arith.addf %93, %95 : vector<8x256xf32>
    %97 = vector.broadcast %3 : vector<8x1xf32> to vector<8x256xf32>
    %98 = arith.mulf %1, %97 : vector<8x256xf32>
    %99 = arith.addf %96, %98 : vector<8x256xf32>
    %c0_51 = arith.constant 0 : index
    %c0_52 = arith.constant 0 : index
    %c0_53 = arith.constant 0 : index
    %100 = vector.load %arg6[%c0_51, %c0_52, %c0_53] : memref<1x8x256xf32, #tpu.memory_space<vmem>>, vector<1x8x256xf32>
    %101 = vector.shape_cast %100 : vector<1x8x256xf32> to vector<8x256xf32>
    %102 = vector.shape_cast %99 : vector<8x256xf32> to vector<1x8x256xf32>
    tpu.vector_store %arg6[%c0_51, %c0_52, %c0_53], %102 {strides = array<i32>} : memref<1x8x256xf32, #tpu.memory_space<vmem>>, vector<1x8x256xf32>,
    return
  }
  func.func @transform_0(%arg0: i32) -> (i32, i32, i32) {
    %c0_i32 = arith.constant 0 : i32
    %c0_i32_0 = arith.constant 0 : i32
    %c0_i32_1 = arith.constant 0 : i32
    return %arg0, %c0_i32, %c0_i32_0 : i32, i32, i32
  }
  func.func @transform_1(%arg0: i32) -> (i32, i32, i32, i32) {
    %c0_i32 = arith.constant 0 : i32
    %c0_i32_0 = arith.constant 0 : i32
    %c0_i32_1 = arith.constant 0 : i32
    %c0_i32_2 = arith.constant 0 : i32
    return %arg0, %c0_i32, %c0_i32_0, %c0_i32_1 : i32, i32, i32, i32
  }
  func.func @transform_2(%arg0: i32) -> (i32, i32, i32) {
    %c0_i32 = arith.constant 0 : i32
    %c0_i32_0 = arith.constant 0 : i32
    %c0_i32_1 = arith.constant 0 : i32
    return %arg0, %c0_i32, %c0_i32_0 : i32, i32, i32
  }
  func.func @transform_3(%arg0: i32) -> (i32, i32) {
    %c0_i32 = arith.constant 0 : i32
    %c0_i32_0 = arith.constant 0 : i32
    %c0_i32_1 = arith.constant 0 : i32
    return %c0_i32, %c0_i32_0 : i32, i32
  }
  func.func @transform_4(%arg0: i32) -> (i32, i32) {
    %c0_i32 = arith.constant 0 : i32
    %c0_i32_0 = arith.constant 0 : i32
    %c0_i32_1 = arith.constant 0 : i32
    return %c0_i32, %c0_i32_0 : i32, i32
  }
  func.func @transform_5(%arg0: i32) -> (i32, i32, i32) {
    %c0_i32 = arith.constant 0 : i32
    %c0_i32_0 = arith.constant 0 : i32
    %c0_i32_1 = arith.constant 0 : i32
    return %arg0, %c0_i32, %c0_i32_0 : i32, i32, i32
  }
}

</mosaic_0001>

<bundles_post_ra>
// kernel: da_conv_forward.1
= control target key start
LH: loop header
LB: loop body
LE: loop exit
PB: predicated region body
PF: predicated region fallthrough
CT: control target
= control target key end

     0   :  { %s725_s18 = smov 0   ;;  %s907_s0 = inlined_call_operand.vmem [shape: f32[2,8,256], index: 0, kind: input, shape index: {}]   ;;  %s908_s1 = inlined_call_operand.vmem [shape: f32[2,9,8,1], index: 1, kind: input, shape index: {}]   ;;  %s909_s2 = inlined_call_operand.vmem [shape: f32[2,8,1], index: 2, kind: input, shape index: {}]   ;;  %s910_s3 = inlined_call_operand.vmem [shape: f32[8,8], index: 3, kind: input, shape index: {}]   ;;  %s911_s4 = inlined_call_operand.vmem [shape: f32[8,1], index: 4, kind: input, shape index: {}]   ;;  %s912_s5 = inlined_call_operand.vmem [shape: f32[2,8,256], index: 5, kind: output, shape index: {}]  }
   0x1 LB: > { %s632_s19 = sadd.s32 4294967295, %s683_s18   ;;  %p636_p0 = scmp.ge.s32.totalorder %s683_s18, 1  ;;  %s683_s18 = sphi %s725_s18, %s15_s18  }
   0x2   : > { %p206_p1 = scmp.lt.s32.totalorder %s683_s18, 3 }
   0x4   : > { %p207_p2 = pnand %p636_p0, %p206_p1 }
   0x5   : > { %p243_p3 = scmp.lt.s32.totalorder (!%p207_p2), %s632_s19, 1  ;;  %v685_v0 = vmov (!%p207_p2), 0   ;;  %s686_s28 = smov (!%p207_p2), 17   ;;  %v461_v12 = vld [vmem:[%s911_s4] sm:$0xff] (!%p207_p2)  ;;  %v694_v14 = vmov (!%p207_p2), 0.0   ;;  %v265_v23 = vlaneseq (!%p207_p2) }
   0x6   : > { %210 = sbr.rel (%p207_p2) target bundleno = 422 (0x1a6), region = 40  ;;  %676 = vset.pattern.permute.xlu1 (!%p207_p2), %v685_v0  ;;  %675 = vset.pattern.permute.xlu0 (!%p207_p2), %v685_v0  ;;  %s687_s29 = smov (!%p207_p2), 16  }
   0x7   : > { %s688_s30 = smov (!%p207_p2), 15   ;;  %s689_s6 = smov (!%p207_p2), 1   ;;  %535 = vmatprep.mubr.f32.mxu0 (!%p207_p2), %v694_v14  ;;  %v787_v26 = vand.u32 (!%p207_p2), 127, %v265_v23 }
   0x8   : > { %s690_s7 = smov (!%p207_p2), 127   ;;  %s691_s8 = smov (!%p207_p2), 113  }
   0x9   : > { %s692_s9 = smov (!%p207_p2), 112   ;;  %s693_s11 = smov (!%p207_p2), 111   ;;  %v790_v29 = vadd.s32 (!%p207_p2), 128, %v787_v26  ;;  %v272_v30 = vand.u32 (!%p207_p2), 15, %v787_v26  ;;  %vm291_vm0 = vcmp.lt.s32.totalorder (!%p207_p2), %v787_v26, 17  ;;  %vm268_vm1 = vcmp.ge.s32.totalorder (!%p207_p2), %v787_v26, 16 }
   0xa   : > { %vm312_vm3 = vcmp.lt.s32.totalorder (!%p207_p2), %v787_v26, 16  ;;  %vm332_vm5 = vcmp.lt.s32.totalorder (!%p207_p2), %v787_v26, 15  ;;  %vm354_vm8 = vcmp.lt.s32.totalorder (!%p207_p2), %v787_v26, 1  ;;  %vm374_vm11 = vcmp.lt.s32.totalorder (!%p207_p2), %v787_v26, 127 }
   0xb   : > { %v273_v33 = vand.u32 (!%p207_p2), 15, %v790_v29  ;;  %vm798_vm2 = vcmp.ge.s32.totalorder (!%p207_p2), %v272_v30, 1  ;;  %vm803_vm4 = vcmp.le.s32.totalorder (!%p207_p2), %v272_v30, 14  ;;  %vm271_vm12 = vcmp.lt.s32.totalorder (!%p207_p2), %v790_v29, 240 }
   0xc   : > { %vm294_vm6 = vmand (!%p207_p2), %vm268_vm1, %vm798_vm2  ;;  %vm394_vm13 = vcmp.lt.s32.totalorder (!%p207_p2), %v787_v26, 113  ;;  %vm416_vm15 = vcmp.lt.s32.totalorder (!%p207_p2), %v787_v26, 112 }
   0xd   : > { %s926_s19 = smov (!%p243_p3, %s632_s19), 1  ;;  %vm816_vm7 = vcmp.ge.s32.totalorder %v273_v33, 1  ;;  %vm821_vm9 = vcmp.le.s32.totalorder %v273_v33, 14  ;;  %vm829_vm10 = vmand %vm268_vm1, %vm803_vm4 }
   0xe   : > { %s654_s20 = sshll.u32 %s926_s19, 4  ;;  %s656_s21 = smul.u32 72, %s926_s19  ;;  %vm867_vm14 = vmand %vm271_vm12, %vm816_vm7 }
   0xf   : > { %s247_s24 = scalar_lea.vmem %s907_s0, %s654_s20  ;;  %s640_s10 = sshll.u32 %s926_s19, 3 }
  0x10   : > { %v742_v1 = vld [vmem:[%s247_s24 + $0x8] sm:$0xff]  ;;  %v744_v2 = vld [vmem:[%s247_s24] sm:$0xff]  ;;  %s749_s27 = scalar_lea.vmem %s908_s1, %s656_s21  ;;  %s256_s16 = scalar_lea.vmem %s909_s2, %s640_s10 }
  0x11   : > { %289 = vrot.lane.b32.xlu1 %v742_v1, %s686_s28  ;;  %287 = vrot.lane.b32.xlu0 %v744_v2, %s686_s28  ;;  %v644_v3 = vld [vmem:[%s749_s27 + $0x8] sm:$0xff]  ;;  %v643_v4 = vld [vmem:[%s749_s27 + $0x20] sm:$0xff]  ;;  %s261_s24 = scalar_lea.vmem %s912_s5, %s654_s20 }
  0x12   : > { %v645_v5 = vld [vmem:[%s749_s27 + $0x10] sm:$0xff]  ;;  %v296_v6 = vld [vmem:[%s749_s27] sm:$0xff]  ;;  %v646_v7 = vld [vmem:[%s749_s27 + $0x18] sm:$0xff] }
  0x13   : > { %v647_v8 = vld [vmem:[%s749_s27 + $0x28] sm:$0xff]  ;;  %v648_v9 = vld [vmem:[%s749_s27 + $0x30] sm:$0xff]  ;;  %v649_v10 = vld [vmem:[%s749_s27 + $0x38] sm:$0xff] }
  0x14   : > { %v650_v11 = vld [vmem:[%s749_s27 + $0x40] sm:$0xff] }
  0x15   : > { %321 = vperm.xlu1 %676, %v644_v3   ;;  %282 = vperm.xlu0 %675, %v643_v4   ;;  %v264_v13 = vld [vmem:[%s256_s16] sm:$0xff] }
  0x19   : > { %343 = vperm.xlu1 %676, %v645_v5   ;;  %301 = vperm.xlu0 %675, %v296_v6  }
  0x1d   : > { %308 = vrot.lane.b32.xlu1 %v744_v2, %s687_s29  ;;  %363 = vperm.xlu0 %675, %v646_v7  }
  0x21   : > { %383 = vperm.xlu1 %676, %v647_v8   ;;  %310 = vrot.lane.b32.xlu0 %v742_v1, %s687_s29 }
  0x25   : > { %330 = vrot.lane.b32.xlu1 %v742_v1, %s688_s30  ;;  %328 = vrot.lane.b32.xlu0 %v744_v2, %s688_s30 }
  0x29   : > { %350 = vrot.lane.b32.xlu1 %v744_v2, %s689_s6  ;;  %405 = vperm.xlu0 %675, %v648_v9  }
  0x2d   : > { %425 = vperm.xlu1 %676, %v649_v10   ;;  %352 = vrot.lane.b32.xlu0 %v742_v1, %s689_s6 }
  0x31   : > { %372 = vrot.lane.b32.xlu1 %v742_v1, %s690_s7  ;;  %370 = vrot.lane.b32.xlu0 %v744_v2, %s690_s7 }
  0x35   : > { %390 = vrot.lane.b32.xlu1 %v744_v2, %s691_s8  ;;  %447 = vperm.xlu0 %675, %v650_v11  }
  0x39   : > { %412 = vrot.lane.b32.xlu1 %v744_v2, %s692_s9  ;;  %392 = vrot.lane.b32.xlu0 %v742_v1, %s691_s8 }
  0x3d   : > { %432 = vrot.lane.b32.xlu1 %v744_v2, %s693_s11  ;;  %414 = vrot.lane.b32.xlu0 %v742_v1, %s692_s9 }
  0x41   : > { %464 = vperm.xlu1 %676, %v461_v12   ;;  %434 = vrot.lane.b32.xlu0 %v742_v1, %s693_s11 }
  0x45   : > { %544 = vperm.xlu0 %675, %v264_v13  }
  0x83   : > { %v290_v15 = vpop.permute.xlu1 %289  ;;  %v288_v16 = vpop.permute.xlu0 %287 }
  0x84   : > { %v293_v38 = vsel %vm291_vm0, %v290_v15, %v288_v16  ;;  %v292_v40 = vsel %vm291_vm0, %v288_v16, %v290_v15  ;;  %vm436_vm0 = vcmp.lt.s32.totalorder %v787_v26, 111 }
  0x85   : > { %v297_v45 = vsel %vm294_vm6, %v293_v38, 0.0  ;;  %v298_v50 = vsel %vm816_vm7, %v292_v40, 0.0 }
  0x94   : > { %v322_v17 = vpop.permute.xlu1 %321  ;;  %v283_v18 = vpop.permute.xlu0 %282 }
  0x95   : > { %v285_v57 = vmul.f32 %v283_v18, %v744_v2  ;;  %v286_v61 = vmul.f32 %v283_v18, %v742_v1 }
  0x98   : > { %v344_v19 = vpop.permute.xlu1 %343  ;;  %v302_v20 = vpop.permute.xlu0 %301 }
  0x99   : > { %v304_v51 = vmul.f32 %v302_v20, %v297_v45  ;;  %v305_v54 = vmul.f32 %v302_v20, %v298_v50 }
  0x9b   : > { %v306_v4 = vadd.f32 %v304_v51, %v285_v57  ;;  %v307_v8 = vadd.f32 %v305_v54, %v286_v61 }
  0x9c   : > { %v309_v21 = vpop.permute.xlu1 %308  ;;  %v783_v22 = vpop.permute.xlu0 %363 }
  0xa0   : > { %v785_v24 = vpop.permute.xlu1 %383  ;;  %v311_v25 = vpop.permute.xlu0 %310 }
  0xa1   : > { %v314_v39 = vsel %vm312_vm3, %v311_v25, %v309_v21  ;;  %v313_v52 = vsel %vm312_vm3, %v309_v21, %v311_v25 }
  0xa2   : > { %v317_v46 = vsel %vm268_vm1, %v314_v39, 0.0  ;;  %v325_v62 = vmul.f32 %v322_v17, %v313_v52  ;;  %vm440_vm1 = vmand %vm271_vm12, %vm821_vm9 }
  0xa3   : > { %v324_v58 = vmul.f32 %v322_v17, %v317_v46 }
  0xa4   : > { %v331_v27 = vpop.permute.xlu1 %330  ;;  %v329_v28 = vpop.permute.xlu0 %328  ;;  %v327_v14 = vadd.f32 %v325_v62, %v307_v8 }
  0xa5   : > { %v334_v44 = vsel %vm332_vm5, %v331_v27, %v329_v28  ;;  %v333_v47 = vsel %vm332_vm5, %v329_v28, %v331_v27  ;;  %v326_v11 = vadd.f32 %v324_v58, %v306_v4  ;;  %v460_v58 = vld [vmem:[%s910_s3] sm:$0xff]  ;;  %vm467_vm5 = vcmask 64512  }
  0xa6   : > { %v339_v55 = vsel %vm829_vm10, %v334_v44, 0.0  ;;  %v340_v59 = vsel %vm821_vm9, %v333_v47, 0.0 }
  0xa7   : > { %v346_v5 = vmul.f32 %v344_v19, %v339_v55  ;;  %v347_v9 = vmul.f32 %v344_v19, %v340_v59 }
  0xa8   : > { %v351_v31 = vpop.permute.xlu1 %350  ;;  %v793_v32 = vpop.permute.xlu0 %405 }
  0xa9   : > { %v348_v18 = vadd.f32 %v346_v5, %v326_v11  ;;  %v349_v23 = vadd.f32 %v347_v9, %v327_v14 }
  0xac   : > { %v808_v36 = vpop.permute.xlu1 %425  ;;  %v353_v37 = vpop.permute.xlu0 %352 }
  0xad   : > { %v356_v53 = vsel %vm354_vm8, %v353_v37, %v351_v31  ;;  %v355_v56 = vsel %vm354_vm8, %v351_v31, %v353_v37 }
  0xae   : > { %v359_v63 = vsel %vm798_vm2, %v356_v53, 0.0  ;;  %v360_v6 = vsel %vm816_vm7, %v355_v56, 0.0 }
  0xaf   : > { %v366_v12 = vmul.f32 %v783_v22, %v359_v63  ;;  %v367_v15 = vmul.f32 %v783_v22, %v360_v6 }
  0xb0   : > { %v373_v48 = vpop.permute.xlu1 %372  ;;  %v371_v49 = vpop.permute.xlu0 %370 }
  0xb1   : > { %v375_v60 = vsel %vm374_vm11, %v371_v49, %v373_v48  ;;  %v376_v7 = vsel %vm374_vm11, %v373_v48, %v371_v49  ;;  %v368_v22 = vadd.f32 %v366_v12, %v348_v18  ;;  %v369_v33 = vadd.f32 %v367_v15, %v349_v23 }
  0xb2   : > { %v379_v10 = vsel %vm803_vm4, %v375_v60, 0.0  ;;  %v380_v16 = vsel %vm821_vm9, %v376_v7, 0.0 }
  0xb3   : > { %v386_v19 = vmul.f32 %v785_v24, %v379_v10  ;;  %v387_v30 = vmul.f32 %v785_v24, %v380_v16 }
  0xb4   : > { %v391_v0 = vpop.permute.xlu1 %390  ;;  %v448_v3 = vpop.permute.xlu0 %447 }
  0xb5   : > { %v388_v38 = vadd.f32 %v386_v19, %v368_v22  ;;  %v389_v43 = vadd.f32 %v387_v30, %v369_v33 }
  0xb8   : > { %v393_v17 = vpop.permute.xlu0 %392  ;;  %v413_v25 = vpop.permute.xlu1 %412 }
  0xb9   : > { %v395_v20 = vsel %vm394_vm13, %v391_v0, %v393_v17  ;;  %v396_v21 = vsel %vm394_vm13, %v393_v17, %v391_v0 }
  0xba   : > { %v401_v27 = vsel %vm798_vm2, %v395_v20, 0.0  ;;  %v402_v28 = vsel %vm867_vm14, %v396_v21, 0.0 }
  0xbb   : > { %v408_v31 = vmul.f32 %v793_v32, %v401_v27  ;;  %v409_v39 = vmul.f32 %v793_v32, %v402_v28 }
  0xbc   : > { %v415_v37 = vpop.permute.xlu0 %414  ;;  %v433_v46 = vpop.permute.xlu1 %432 }
  0xbd   : > { %v417_v40 = vsel %vm416_vm15, %v413_v25, %v415_v37  ;;  %v418_v41 = vsel %vm416_vm15, %v415_v37, %v413_v25  ;;  %v410_v44 = vadd.f32 %v408_v31, %v388_v38  ;;  %v411_v47 = vadd.f32 %v409_v39, %v389_v43 }
  0xbe   : > { %v422_v34 = vsel %vm271_vm12, %v418_v41, 0.0  ;;  %v428_v45 = vmul.f32 %v808_v36, %v417_v40 }
  0xbf   : > { %v429_v24 = vmul.f32 %v808_v36, %v422_v34 }
  0xc0   : > { %v435_v32 = vpop.permute.xlu0 %434  ;;  %v430_v51 = vadd.f32 %v428_v45, %v410_v44  ;;  %v465_v59 = vpop.permute.xlu1 %464 }
  0xc1   : > { %v437_v48 = vsel %vm436_vm0, %v433_v46, %v435_v32  ;;  %v438_v49 = vsel %vm436_vm0, %v435_v32, %v433_v46  ;;  %v431_v52 = vadd.f32 %v429_v24, %v411_v47 }
  0xc2   : > { %v443_v50 = vsel %vm803_vm4, %v437_v48, 0.0  ;;  %v444_v26 = vsel %vm440_vm1, %v438_v49, 0.0 }
  0xc3   : > { %v450_v53 = vmul.f32 %v448_v3, %v443_v50  ;;  %v451_v54 = vmul.f32 %v448_v3, %v444_v26 }
  0xc4   : > { %v545_v35 = vpop.permute.xlu0 %544 }
  0xc5   : > { %v453_v55 = vadd.f32 %v451_v54, %v431_v52  ;;  %v452_v36 = vadd.f32 %v450_v53, %v430_v51  ;;  %v547_v61 = vmul.f32 %v545_v35, %v744_v2  ;;  %v548_v0 = vmul.f32 %v545_v35, %v742_v1 }
  0xc7   : > { %vm455_vm2 = vcmp.ge.f32.partialorder %v453_v55, 0.0  ;;  %v457_v42 = vmul.f32 0.1, %v453_v55  ;;  %vm454_vm3 = vcmp.ge.f32.partialorder %v452_v36, 0.0  ;;  %v456_v29 = vmul.f32 0.1, %v452_v36 }
  0xc9   : > { %v459_v56 = vsel %vm455_vm2, %v453_v55, %v457_v42  ;;  %v458_v57 = vsel %vm454_vm3, %v452_v36, %v456_v29 }
  0xca   : > { %471 = vmatprep.subr.mxu0 %v459_v56 }
  0xcb   : > { %472 = vmatpush1.msra.mxu0 %v458_v57 }
  0xcc   : > { %651 = vmatmul.mubr.msk.f32.vlgmr.msra.gmra.mrb[0].mxu0 %vm467_vm5, %v460_v58 }
 0x19f   : > { %v537_v60 = vpop.f32.mrb[0].mxu0 }
 0x1a0   : > { %v538_v62 = vadd.f32 %v537_v60, %v465_v59  ;;  %v539_v63 = vpop.f32.mrb[1].mxu0 }
 0x1a1   : > { %v540_v3 = vadd.f32 %v539_v63, %v465_v59 }
 0x1a2   : > { %v549_v4 = vadd.f32 %v547_v61, %v538_v62 }
 0x1a3   : > { %v550_v5 = vadd.f32 %v548_v0, %v540_v3 }
 0x1a4   : > { %551 = vst [vmem:[%s261_s24] sm:$0xff] %v549_v4 }
 0x1a5   : > { %552 = vst [vmem:[%s261_s24 + $0x8] sm:$0xff] %v550_v5 }
 0x1a6 PF: > { %s15_s18 = sadd.s32 1, %s683_s18  }
 0x1a7   : > { %p12_p4 = scmp.ge.s32.totalorder %s15_s18, 4  }
 0x1a9   :  { %14 = sbr.rel (!%p12_p4) target bundleno = 1 (0x1), region = 84 }

</bundles_post_ra>
